<compile_context>
chip_gen: v6e
topology: v6e:2x2x1
jax: 0.10.0
libtpu: 0.0.40
codegen_flags: <defaults>
</compile_context>

<pallas_src>
import math

import jax
import jax.numpy as jnp
from jax.experimental import pallas as pl
from jax.experimental.pallas import tpu as pltpu


def _encoder_identity_kernel(x_ref, o_ref):
    # TODO(synk): base-class Encoder.forward is abstract (NotImplementedError);
    # a concrete subclass replaces this pass-through with real compute, writing
    # results directly into o_ref (no extra VMEM staging).
    o_ref[...] = x_ref[...]


def _round_up(v, m):
    return ((v + m - 1) // m) * m


def _lane_dense_2d(shape):
    """Fold trailing axes into a lane-dense (rows, cols) slab.

    Prefers the smallest trailing fold whose cols is a multiple of 128
    (unmasked vst stores). If none exists, folds until cols >= 128 (keeping
    rows > 1 when possible) and reports the lane-padded column count.
    Returns (rows, cols, cols_padded).
    """
    if len(shape) == 0:
        return 1, 1, 128
    # Smallest trailing fold that is already a multiple of 128.
    cols = 1
    for ax in range(len(shape) - 1, -1, -1):
        cols *= shape[ax]
        if cols % 128 == 0:
            rows = int(math.prod(shape[:ax])) if ax > 0 else 1
            return rows, cols, cols
    # Fallback: fold until cols >= 128 (or everything), then pad lanes to 128.
    cols = 1
    split = len(shape)
    for ax in range(len(shape) - 1, -1, -1):
        cols *= shape[ax]
        split = ax
        if cols >= 128:
            break
    rows = int(math.prod(shape[:split])) if split > 0 else 1
    return rows, cols, _round_up(cols, 128)


def _chip_tuning():
    """(target_block_bytes, vmem_limit_bytes or None) tuned per TPU generation."""
    kind = ""
    try:
        kind = jax.devices()[0].device_kind.lower()
    except Exception:
        pass
    if "v7" in kind:
        # 3.2 TB/s HBM but only 64 MiB physical VMEM/TC: ~6 MiB blocks,
        # in+out double-buffered = 24 MiB; raise scoped VMEM with headroom.
        return 6 * 1024 * 1024, 48 << 20
    if "v6" in kind:
        # 4 MiB blocks: 4 x block = 16 MiB fits the 32 MiB default scoped VMEM.
        return 4 * 1024 * 1024, None
    # v5e (16 MiB default scoped VMEM) and unknown chips: stay conservative.
    return 2 * 1024 * 1024, None


def _pick_tiles(rows, cols, itemsize, target_block_bytes):
    """Pick (tile_r, tile_c): sublane/lane aligned, block <= target budget."""
    # Lane tile: multiple of 128, capped so an 8-row block fits the budget.
    max_c = max(128, (target_block_bytes // max(1, 8 * itemsize)) // 128 * 128)
    tile_c = min(cols, max_c)

    if rows <= 8:
        tile_r = rows  # equals full dim -> (8,128) rule satisfied
    else:
        max_r = max(8, (target_block_bytes // max(1, tile_c * itemsize)) // 8 * 8)
        tile_r = min(_round_up(rows, 8), max_r)
        # Guarantee >= 2 grid steps over rows so v7x's 2 TensorCores both get
        # work under dimension_semantics="parallel" (neutral on v5e/v6e).
        if tile_r >= rows:
            tile_r = max(8, _round_up(pl.cdiv(rows, 2), 8))
    return tile_r, tile_c


def encoder_forward(x, *args):
    """Forward for the abstract Encoder base class.

    The base class defines no computation, so the identity is returned with no
    kernel launch and no HBM traffic (the pure pass-through is free).
    """
    return x


def encoder_forward_kernel(x, *args, small_input_bypass_bytes=1 << 20):
    """Tiled, double-buffered Pallas identity skeleton for concrete subclasses.

    x: any-rank array, internally flattened to a lane-dense 2-D [rows, cols]
    slab (columns padded to a multiple of 128 if needed) and copied through a
    (tile_r, tile_c) BlockSpec pipeline. Returns an array equal to x.
    """
    # Small-input bypass: launch + DMA descriptor setup dominates below ~1 MiB.
    if x.size * x.dtype.itemsize < small_input_bypass_bytes:
        return x

    orig_shape = x.shape
    rows, cols, cols_padded = _lane_dense_2d(orig_shape)
    x2 = x.reshape(rows, cols)  # free for contiguous inputs
    if cols_padded != cols:
        x2 = jnp.pad(x2, ((0, 0), (0, cols_padded - cols)))

    target_block_bytes, vmem_limit = _chip_tuning()
    tile_r, tile_c = _pick_tiles(rows, cols_padded, x2.dtype.itemsize,
                                 target_block_bytes)
    grid = (pl.cdiv(rows, tile_r), pl.cdiv(cols_padded, tile_c))

    out = pl.pallas_call(
        _encoder_identity_kernel,
        out_shape=jax.ShapeDtypeStruct((rows, cols_padded), x2.dtype),
        grid_spec=pltpu.PrefetchScalarGridSpec(
            num_scalar_prefetch=0,
            grid=grid,
            in_specs=[pl.BlockSpec((tile_r, tile_c), lambda i, j: (i, j))],
            out_specs=pl.BlockSpec((tile_r, tile_c), lambda i, j: (i, j)),
        ),
        compiler_params=pltpu.CompilerParams(
            dimension_semantics=("parallel", "parallel"),
            vmem_limit_bytes=vmem_limit,
        ),
    )(x2)

    if cols_padded != cols:
        out = out[:, :cols]
    return out.reshape(orig_shape)


if __name__ == "__main__":
    key = jax.random.PRNGKey(0)
    # Small NCHW-style input consistent with an encoder-decoder pipeline.
    x = jax.random.normal(key, (2, 4, 16, 16), dtype=jnp.float32)

    # Production fast path: pure identity, no kernel launch, zero HBM traffic.
    y_fast = encoder_forward(x)
    jax.block_until_ready(y_fast)
    assert y_fast.shape == x.shape and y_fast.dtype == x.dtype
    assert bool(jnp.allclose(y_fast, x))

    # Pipelined skeleton: force the Pallas kernel once (bypass disabled) to
    # validate the tiled HBM->VMEM->HBM copy scaffold on-device.
    y_kernel = encoder_forward_kernel(x, small_input_bypass_bytes=0)
    jax.block_until_ready(y_kernel)
    assert y_kernel.shape == x.shape and y_kernel.dtype == x.dtype
    assert bool(jnp.allclose(y_kernel, x))

    # Also exercise the non-128-multiple fallback (lane-padding path).
    x_odd = jax.random.normal(jax.random.PRNGKey(1), (3, 5, 7), dtype=jnp.float32)
    y_odd = encoder_forward_kernel(x_odd, small_input_bypass_bytes=0)
    jax.block_until_ready(y_odd)
    assert y_odd.shape == x_odd.shape and bool(jnp.allclose(y_odd, x_odd))

    print("KERNEL_OK")
</pallas_src>

<mosaic_0001>
module attributes {stable_mosaic.version = 11 : i64} {
  func.func @_encoder_identity_kernel(%arg0: i32, %arg1: i32, %arg2: memref<8x256xf32, #tpu.memory_space<vmem>>, %arg3: memref<8x256xf32, #tpu.memory_space<vmem>>) attributes {dimension_semantics = [#tpu.dimension_semantics<parallel>, #tpu.dimension_semantics<parallel>], iteration_bounds = array<i64: 1, 1>, scalar_prefetch = 0 : i64, scratch_operands = 0 : i64, tpu.core_type = #tpu.core_type<tc>, window_params = [{transform_indices = @transform_0, window_bounds = array<i64: 8, 256>}, {transform_indices = @transform_1, window_bounds = array<i64: 8, 256>}]} {
    %c0 = arith.constant 0 : index
    %c0_0 = arith.constant 0 : index
    %0 = vector.load %arg2[%c0, %c0_0] : memref<8x256xf32, #tpu.memory_space<vmem>>, vector<8x256xf32>
    %c0_1 = arith.constant 0 : index
    %c0_2 = arith.constant 0 : index
    %1 = vector.load %arg3[%c0_1, %c0_2] : memref<8x256xf32, #tpu.memory_space<vmem>>, vector<8x256xf32>
    tpu.vector_store %arg3[%c0_1, %c0_2], %0 {strides = array<i32>} : memref<8x256xf32, #tpu.memory_space<vmem>>, vector<8x256xf32>,
    return
  }
  func.func @transform_0(%arg0: i32, %arg1: i32) -> (i32, i32) {
    %c0_i32 = arith.constant 0 : i32
    return %arg0, %arg1 : i32, i32
  }
  func.func @transform_1(%arg0: i32, %arg1: i32) -> (i32, i32) {
    %c0_i32 = arith.constant 0 : i32
    return %arg0, %arg1 : i32, i32
  }
}

</mosaic_0001>

<bundles_post_ra>
// kernel: tpu_custom_call.1
= control target key start
LH: loop header
LB: loop body
LE: loop exit
PB: predicated region body
PF: predicated region fallthrough
CT: control target
= control target key end

     0   :  { %6 = vsyncpa [#allocation3], 0  ;;  %s104_s0 = inlined_call_operand.hbm [shape: f32[8,256], index: 0, kind: input, shape index: {}]   ;;  %s105_s1 = inlined_call_operand.hbm [shape: f32[8,256], index: 1, kind: output, shape index: {}]  }
   0x1   :  { %7 = vsyncpa [#allocation4], 0  ;;  %s86_s6 = smov [#allocation2]  }
   0x2   :  { %s14_s7 = sshll.u32 %s86_s6, 4  ;;  %s15_s7 = int_to_ptr.vmem [resolvable:$true] %s14_s7 }
   0x3   :  { %s50_s8 = scalar_lea.vmem %s15_s7, 256  ;;  %p55_p1 = scmp.lt.s32.totalorder %s15_s7, %s15_s7 }
   0x4   :  { %p51_p0 = scmp.ne.s32.totalorder %s15_s7, %s50_s8  ;;  %p56_p2 = scmp.lt.s32.totalorder %s50_s8, %s50_s8 }
   0x6   :  { %p57_p3 = por %p56_p2, %p55_p1 }
   0x8   :  { %p58_p4 = pnand %p57_p3, %p51_p0 }
   0xa   :  { %61 = shalt.err (!%p58_p4)
}
   0xb   :  { %17 = dma.hbm_to_vmem [thread:$0]  %s104_s0, 256, %s15_s7, [#allocation3]  }
   0xc   :  { %82 = dma.done.wait [#allocation3], 256  }
   0xd   :  { %83 = vsyncadd [#allocation3], 4294967040  ;;  %s87_s11 = smov [#allocation5]   ;;  %v21_v0 = vld [vmem:[#allocation2] sm:$0xff]  ;;  %v22_v1 = vld [vmem:[#allocation2 + $0x8] sm:$0xff] }
   0xe   :  { %s31_s12 = sshll.u32 %s87_s11, 4  ;;  %23 = vst [vmem:[#allocation5] sm:$0xff] %v21_v0  ;;  %24 = vst [vmem:[#allocation5 + $0x8] sm:$0xff] %v22_v1  ;;  %s32_s12 = int_to_ptr.vmem [resolvable:$true] %s31_s12 }
   0xf   :  { %s62_s13 = scalar_lea.vmem %s32_s12, 256  ;;  %p67_p6 = scmp.lt.s32.totalorder %s32_s12, %s32_s12 }
  0x10   :  { %p63_p5 = scmp.ne.s32.totalorder %s32_s12, %s62_s13  ;;  %p68_p7 = scmp.lt.s32.totalorder %s62_s13, %s62_s13 }
  0x12   :  { %p69_p8 = por %p68_p7, %p67_p6 }
  0x14   :  { %p70_p9 = pnand %p69_p8, %p63_p5 }
  0x16   :  { %73 = shalt.err (!%p70_p9)
}
  0x17   :  { %34 = dma.vmem_to_hbm [thread:$0]  %s32_s12, 256, %s105_s1, [#allocation4]  }
  0x18   :  { %84 = dma.done.wait [#allocation4], 256  }
  0x19   :  { %85 = vsyncadd [#allocation4], 4294967040 }
  0x1a   :  { %38 = vsyncpa [#allocation3], 1 }
  0x1b   :  { %39 = vsyncpa [#allocation4], 1 }

</bundles_post_ra>
